<compile_context>
chip_gen: v5e
topology: v5e:2x2
jax: 0.10.0
libtpu: 0.0.40
codegen_flags: <defaults>
</compile_context>

<pallas_src>
import functools

import jax
import jax.numpy as jnp
from jax.experimental import pallas as pl
from jax.experimental.pallas import tpu as pltpu


def _orthogonal_init(key, out_dim, in_dim, gain):
    """Deterministic orthogonal init (like nn.init.orthogonal_) scaled by gain."""
    a = jax.random.normal(key, (max(out_dim, in_dim), min(out_dim, in_dim)),
                          dtype=jnp.float32)
    q, r = jnp.linalg.qr(a)
    d = jnp.diag(r)
    # sign correction so the decomposition is unique (treat 0 as +1)
    q = q * jnp.where(d == 0, 1.0, jnp.sign(d))[None, :]
    if out_dim < in_dim:
        q = q.T
    w = q[:out_dim, :in_dim]  # [out, in] like PyTorch Linear.weight
    return gain * w


def diag_gaussian_kernel(x_ref, w_ref, b_ref, out_ref):
    """One fused projection: out = [mean | exp(clamp(logstd, -6, 2))]."""
    x = x_ref[...]
    # Single MXU pass over the fused [D_in, 2*D_out] weight; f32 accumulation.
    y = jnp.dot(x, w_ref[...], preferred_element_type=jnp.float32) + b_ref[...]
    d_out = y.shape[-1] // 2
    # Lane mask selecting the logstd half; avoids sub-vreg slicing/concat.
    lane = jax.lax.broadcasted_iota(jnp.int32, y.shape, dimension=1)
    is_std_lane = lane >= d_out
    std = jnp.exp(jnp.clip(y, -6.0, 2.0))  # exp on mean lanes is discarded (EUP slot, free-ish)
    out_ref[...] = jnp.where(is_std_lane, std, y).astype(out_ref.dtype)


@functools.partial(jax.jit, static_argnames=("block_b", "compute_dtype"))
def diag_gaussian_forward(x, w_mean, b_mean, w_logstd, b_logstd,
                          *, block_b=2048, compute_dtype=jnp.float32):
    """Returns (action_mean, action_std) of the FixedNormal distribution.

    x:        [B, D_in]
    w_mean:   [D_in, D_out]   (transposed vs. PyTorch Linear.weight)
    w_logstd: [D_in, D_out]
    b_mean, b_logstd: [D_out]
    """
    B, D_in = x.shape
    D_out = w_mean.shape[1]
    D2 = 2 * D_out

    # Fuse the two heads: one [D_in, 2*D_out] weight, one [1, 2*D_out] bias.
    w = jnp.concatenate([w_mean, w_logstd], axis=1).astype(compute_dtype)
    b = jnp.concatenate([b_mean, b_logstd]).reshape(1, D2).astype(jnp.float32)
    x_c = x.astype(compute_dtype)

    # Batch tile: full batch if small, else big 8-aligned tiles (double-buffered).
    tb = B if B <= block_b else block_b
    grid = (pl.cdiv(B, tb),)

    out = pl.pallas_call(
        diag_gaussian_kernel,
        out_shape=jax.ShapeDtypeStruct((B, D2), jnp.float32),
        grid=grid,
        in_specs=[
            pl.BlockSpec((tb, D_in), lambda i: (i, 0)),     # x tile, streamed
            pl.BlockSpec((D_in, D2), lambda i: (0, 0)),     # fused W, VMEM-resident
            pl.BlockSpec((1, D2), lambda i: (0, 0)),        # fused bias, VMEM-resident
        ],
        out_specs=pl.BlockSpec((tb, D2), lambda i: (i, 0)),  # fused lane-dense output
        compiler_params=pltpu.CompilerParams(
            dimension_semantics=("parallel",)),              # v7x: shard batch over 2 TCs
    )(x_c, w, b)

    action_mean = out[:, :D_out]
    action_std = out[:, D_out:]
    return action_mean, action_std


if __name__ == "__main__":
    key = jax.random.PRNGKey(0)
    k_x, k_wm, k_wl = jax.random.split(key, 3)

    batch = 8
    num_inputs = 32
    num_outputs = 8
    gain = 0.01

    # Deterministic parameter init mirroring the module's __init__
    # (orthogonal weights with gain=0.01, zero biases).
    wm_torch = _orthogonal_init(k_wm, num_outputs, num_inputs, gain)  # [out, in]
    wl_torch = _orthogonal_init(k_wl, num_outputs, num_inputs, gain)  # [out, in]
    w_mean = wm_torch.T          # [in, out]
    w_logstd = wl_torch.T        # [in, out]
    b_mean = jnp.zeros((num_outputs,), jnp.float32)
    b_logstd = jnp.zeros((num_outputs,), jnp.float32)

    x = jax.random.normal(k_x, (batch, num_inputs), dtype=jnp.float32)

    mean, std = diag_gaussian_forward(x, w_mean, b_mean, w_logstd, b_logstd)
    jax.block_until_ready((mean, std))

    # Pure-JAX reference check.
    ref_mean = x @ w_mean + b_mean
    ref_std = jnp.exp(jnp.clip(x @ w_logstd + b_logstd, -6.0, 2.0))
    assert jnp.allclose(mean, ref_mean, atol=1e-5, rtol=1e-5)
    assert jnp.allclose(std, ref_std, atol=1e-5, rtol=1e-5)

    # Sanity-check the tiled (multi-grid-step) path with a batch > block_b.
    big_b = 4096 + 40  # non-divisible last tile, exercises masked writeback
    xb = jax.random.normal(jax.random.PRNGKey(1), (big_b, num_inputs), jnp.float32)
    mean_b, std_b = diag_gaussian_forward(xb, w_mean, b_mean, w_logstd, b_logstd,
                                          block_b=1024)
    jax.block_until_ready((mean_b, std_b))
    assert jnp.allclose(mean_b, xb @ w_mean + b_mean, atol=1e-5, rtol=1e-5)
    assert jnp.allclose(
        std_b, jnp.exp(jnp.clip(xb @ w_logstd + b_logstd, -6.0, 2.0)),
        atol=1e-5, rtol=1e-5)

    print("KERNEL_OK")
</pallas_src>

<mosaic_0001>
module attributes {stable_mosaic.version = 11 : i64} {
  func.func @diag_gaussian_kernel(%arg0: i32, %arg1: memref<8x32xf32, #tpu.memory_space<vmem>>, %arg2: memref<32x16xf32, #tpu.memory_space<vmem>>, %arg3: memref<1x16xf32, #tpu.memory_space<vmem>>, %arg4: memref<8x16xf32, #tpu.memory_space<vmem>>) attributes {dimension_semantics = [#tpu.dimension_semantics<parallel>], iteration_bounds = array<i64: 1>, scalar_prefetch = 0 : i64, scratch_operands = 0 : i64, tpu.core_type = #tpu.core_type<tc>, window_params = [{transform_indices = @transform_0, window_bounds = array<i64: 8, 32>}, {pipeline_mode = #tpu.pipeline_mode<synchronous>, transform_indices = @transform_1, window_bounds = array<i64: 32, 16>}, {pipeline_mode = #tpu.pipeline_mode<synchronous>, transform_indices = @transform_2, window_bounds = array<i64: 1, 16>}, {transform_indices = @transform_3, window_bounds = array<i64: 8, 16>}]} {
    %c0 = arith.constant 0 : index
    %c0_0 = arith.constant 0 : index
    %0 = vector.load %arg1[%c0, %c0_0] : memref<8x32xf32, #tpu.memory_space<vmem>>, vector<8x32xf32>
    %c0_1 = arith.constant 0 : index
    %c0_2 = arith.constant 0 : index
    %1 = vector.load %arg2[%c0_1, %c0_2] : memref<32x16xf32, #tpu.memory_space<vmem>>, vector<32x16xf32>
    %cst = arith.constant dense<0.000000e+00> : vector<8x16xf32>
    %2 = tpu.matmul %0, %1, %cst {dimension_numbers = #tpu.dot_dimension_numbers<[1], [0], [0], [1], [0, 0, 1, 1], [], []>} : vector<8x32xf32>, vector<32x16xf32>, vector<8x16xf32> -> vector<8x16xf32>
    %c0_3 = arith.constant 0 : index
    %c0_4 = arith.constant 0 : index
    %3 = vector.load %arg3[%c0_3, %c0_4] : memref<1x16xf32, #tpu.memory_space<vmem>>, vector<1x16xf32>
    %4 = vector.broadcast %3 : vector<1x16xf32> to vector<8x16xf32>
    %5 = arith.addf %2, %4 : vector<8x16xf32>
    %6 = tpu.iota {dimensions = array<i32: 1>} : vector<8x16xi32>
    %c8_i32 = arith.constant 8 : i32
    %7 = vector.broadcast %c8_i32 : i32 to vector<8x16xi32>
    %8 = arith.cmpi sge, %6, %7 : vector<8x16xi32>
    %cst_5 = arith.constant -6.000000e+00 : f32
    %cst_6 = arith.constant 2.000000e+00 : f32
    %9 = vector.broadcast %cst_5 : f32 to vector<8x16xf32>
    %10 = arith.maximumf %9, %5 : vector<8x16xf32>
    %11 = vector.broadcast %cst_6 : f32 to vector<8x16xf32>
    %12 = arith.minimumf %11, %10 : vector<8x16xf32>
    %13 = math.exp %12 : vector<8x16xf32>
    %14 = arith.select %8, %13, %5 : vector<8x16xi1>, vector<8x16xf32>
    %c0_7 = arith.constant 0 : index
    %c0_8 = arith.constant 0 : index
    %15 = vector.load %arg4[%c0_7, %c0_8] : memref<8x16xf32, #tpu.memory_space<vmem>>, vector<8x16xf32>
    tpu.vector_store %arg4[%c0_7, %c0_8], %14 {strides = array<i32>} : memref<8x16xf32, #tpu.memory_space<vmem>>, vector<8x16xf32>,
    return
  }
  func.func @transform_0(%arg0: i32) -> (i32, i32) {
    %c0_i32 = arith.constant 0 : i32
    %c0_i32_0 = arith.constant 0 : i32
    return %arg0, %c0_i32 : i32, i32
  }
  func.func @transform_1(%arg0: i32) -> (i32, i32) {
    %c0_i32 = arith.constant 0 : i32
    %c0_i32_0 = arith.constant 0 : i32
    %c0_i32_1 = arith.constant 0 : i32
    return %c0_i32, %c0_i32_0 : i32, i32
  }
  func.func @transform_2(%arg0: i32) -> (i32, i32) {
    %c0_i32 = arith.constant 0 : i32
    %c0_i32_0 = arith.constant 0 : i32
    %c0_i32_1 = arith.constant 0 : i32
    return %c0_i32, %c0_i32_0 : i32, i32
  }
  func.func @transform_3(%arg0: i32) -> (i32, i32) {
    %c0_i32 = arith.constant 0 : i32
    %c0_i32_0 = arith.constant 0 : i32
    return %arg0, %c0_i32 : i32, i32
  }
}

</mosaic_0001>

<bundles_post_ra>
// kernel: diag_gaussian_forward.1
= control target key start
LH: loop header
LB: loop body
LE: loop exit
PB: predicated region body
PF: predicated region fallthrough
CT: control target
= control target key end

     0   :  { %vm23_vm0 = vcmask 261120   ;;  %v47_v9 = vlaneseq  ;;  %vm55_vm2 = vcmask 130048   ;;  %s106_s1 = inlined_call_operand.vmem [shape: f32[32,16], index: 1, kind: input, shape index: {}]   ;;  %s107_s2 = inlined_call_operand.vmem [shape: f32[1,16], index: 2, kind: input, shape index: {}]   ;;  %s108_s0 = inlined_call_operand.vmem [shape: f32[8,32], index: 0, kind: input, shape index: {}]   ;;  %s109_s3 = inlined_call_operand.vmem [shape: f32[8,16], index: 3, kind: output, shape index: {}]  }
   0x1   :  { %v18_v0 = vld [vmem:[%s106_s1 + $0x18] sm:$0xff]  ;;  %v17_v1 = vld [vmem:[%s106_s1 + $0x10] sm:$0xff]  ;;  %v16_v2 = vld [vmem:[%s106_s1 + $0x8] sm:$0xff] }
   0x2   :  { %39 = vmatpush.msra.mxu0 %v18_v0  ;;  %v15_v3 = vld [vmem:[%s106_s1] sm:$0xff]  ;;  %v48_v12 = vand.u32 127, %v47_v9 }
   0x3   :  { %v14_v4 = vld [vmem:[%s108_s0] sm:$0xff] }
   0x4   :  { %40 = vmatpush.msra.mxu0 %v17_v1  ;;  %v62_v5 = vld [vmem:[%s107_s2] ss:$0 sm:$0xff]  ;;  %vm49_vm1 = vcmp.ge.s32.totalorder %v48_v12, 8 }
   0x6   :  { %41 = vmatpush.msra.mxu0 %v16_v2 }
   0x8   :  { %42 = vmatpush.msra.mxu0 %v15_v3 }
   0x9   :  { %61 = vmatmul.msk.f32.vlgmr.msra.gmra.mxu0 %vm23_vm0, %v14_v4 }
  0x86   :  { %v44_v6 = vpop.f32.mrf.mxu0 }
  0x87   :  { %v45_v7 = vadd.f32 %v62_v5, %v44_v6 }
  0x89   :  { %v50_v8 = vmax.f32 %v45_v7, -6.0 }
  0x8b   :  { %v51_v10 = vmin.f32 %v50_v8, 2.0 }
  0x8d   :  { %v52_v11 = vmul.f32 1.442695, %v51_v10 }
  0x8f   :  { %63 = vpow2.f32 %v52_v11 }
  0x95   :  { %v64_v13 = vpop.eup %63 }
  0x96   :  { %v54_v14 = vsel %vm49_vm1, %v64_v13, %v45_v7 }
  0x97   :  { %56 = vst.msk [vmem:[%s109_s3] sm:$0xff] %vm55_vm2, %v54_v14 }

</bundles_post_ra>
